<compile_context>
chip_gen: v5e
topology: v5e:2x2
jax: 0.10.0
libtpu: 0.0.40
codegen_flags: <defaults>
</compile_context>

<pallas_src>
import functools

import numpy as np
import jax
import jax.numpy as jnp
from jax import lax
from jax.experimental import pallas as pl
from jax.experimental.pallas import tpu as pltpu

N_BINS = 15
NUM_CLASS = 4      # cfg.MODEL.NUM_CLASS for this synthetic run
SAMPLE_TILE = 256  # samples per grid step; raise (e.g. 2048) for large N


def _cece_kernel(lo_ref, mass_ref, w_ref, diff_ref, out_ref, acc_ref):
    # lo_ref:   (bins_pad, 1) int32   first flat sample index of each bin
    # mass_ref: (bins_pad, 1) uint32  samples per bin (0 for padding rows)
    # w_ref:    (bins_pad, C) f32     1/(mass_c*n_bins) where bin k is in class c
    # diff_ref: (1, TILE)     f32     class-sorted (conf - hits), zero padded
    # out_ref:  (1, 1)        f32     SMEM scalar result
    # acc_ref:  (bins_pad, 1) f32     signed per-bin partial sums (persistent)
    t = pl.program_id(0)
    bins_pad = lo_ref.shape[0]
    tile = diff_ref.shape[1]

    @pl.when(t == 0)
    def _init():
        acc_ref[...] = jnp.zeros_like(acc_ref)

    # Global flat sample index for every (bin-row, sample-lane) element.
    idx = t * tile + lax.broadcasted_iota(jnp.int32, (bins_pad, tile), 1)
    # Unsigned range check:  lo <= idx < lo + mass   (one sub + one compare).
    in_bin = (idx - lo_ref[...]).astype(jnp.uint32) < mass_ref[...]
    masked = jnp.where(in_bin, diff_ref[...], 0.0)          # (bins_pad, tile)
    # ONE batched lane reduce: signed partial sum of (conf - hits) per bin.
    acc_ref[...] += jnp.sum(masked, axis=1, keepdims=True)  # (bins_pad, 1)

    @pl.when(t == pl.num_programs(0) - 1)
    def _finalize():
        abs_sums = jnp.abs(acc_ref[...])                             # (bins_pad, 1)
        ece = jnp.sum(abs_sums * w_ref[...], axis=0, keepdims=True)  # (1, C)
        num = jnp.sum(ece * ece)
        den = jnp.sum(ece)
        out_ref[0, 0] = num / den


@functools.partial(jax.jit, static_argnames=("num_class", "n_bins"))
def cece_pallas(confidences, hits, labels, num_class=NUM_CLASS, n_bins=N_BINS):
    n = confidences.shape[0]
    n_bins_total = num_class * n_bins
    bins_pad = ((n_bins_total + 7) // 8) * 8          # sublane-pad the bin axis

    labels = labels.astype(jnp.int32)
    # Group samples by class.  Stable sort preserves in-class order, so bin
    # membership matches the PyTorch boolean-mask indexing exactly.
    # (Labels outside [0, num_class) sort past every class region and are
    # silently ignored, like the reference loop; negative labels unsupported.)
    order = jnp.argsort(labels, stable=True)
    diff_sorted = (confidences.astype(jnp.float32) - hits.astype(jnp.float32))[order]
    counts = jnp.bincount(labels, length=num_class).astype(jnp.int32)
    starts = (jnp.cumsum(counts) - counts).astype(jnp.int32)
    mass = counts // n_bins                           # samples per bin, per class

    # ---- per-(class, bin) tables, hoisted out of the kernel ------------------
    k = jnp.arange(bins_pad, dtype=jnp.int32)
    c_of_k = k // n_bins
    valid = k < n_bins_total
    c_clip = jnp.clip(c_of_k, 0, num_class - 1)
    lo_col = jnp.where(valid, starts[c_clip] + (k % n_bins) * mass[c_clip], 0)
    lo_col = lo_col.reshape(bins_pad, 1)
    mass_col = jnp.where(valid, mass[c_clip], 0).astype(jnp.uint32).reshape(bins_pad, 1)
    # A class with count < n_bins has mass == 0 -> scale == inf and 0*inf == NaN,
    # matching the reference (mean of an empty slice).
    scale = 1.0 / (mass.astype(jnp.float32) * jnp.float32(n_bins))    # (C,)
    scale_of_k = jnp.where(valid, scale[c_clip], 0.0)                 # (bins_pad,)
    w_mat = jnp.where(
        c_of_k[:, None] == jnp.arange(num_class, dtype=jnp.int32)[None, :],
        scale_of_k[:, None], 0.0)                                     # (bins_pad, C)

    # ---- pad the pre-subtracted diff slab to whole sample tiles --------------
    # Padded samples have flat index >= n (outside every bin) and diff == 0.
    n_pad = ((n + SAMPLE_TILE - 1) // SAMPLE_TILE) * SAMPLE_TILE
    diff_row = jnp.zeros((1, n_pad), jnp.float32).at[0, :n].set(diff_sorted)
    num_tiles = n_pad // SAMPLE_TILE

    out = pl.pallas_call(
        _cece_kernel,
        out_shape=jax.ShapeDtypeStruct((1, 1), jnp.float32),
        grid_spec=pltpu.PrefetchScalarGridSpec(
            num_scalar_prefetch=0,
            grid=(num_tiles,),
            in_specs=[
                pl.BlockSpec((bins_pad, 1), lambda t: (0, 0)),          # lo_col
                pl.BlockSpec((bins_pad, 1), lambda t: (0, 0)),          # mass_col
                pl.BlockSpec((bins_pad, num_class), lambda t: (0, 0)),  # w_mat
                pl.BlockSpec((1, SAMPLE_TILE), lambda t: (0, t)),       # diff tile
            ],
            out_specs=pl.BlockSpec((1, 1), lambda t: (0, 0),
                                   memory_space=pltpu.MemorySpace.SMEM),
            scratch_shapes=[pltpu.VMEM((bins_pad, 1), jnp.float32)],
        ),
        compiler_params=pltpu.CompilerParams(
            dimension_semantics=("arbitrary",)),
    )(lo_col, mass_col, w_mat, diff_row)
    return out[0, 0]


def cece_reference(confidences, hits, labels, num_class=NUM_CLASS, n_bins=N_BINS):
    """Pure numpy re-implementation of the PyTorch forward (for checking)."""
    conf = np.asarray(confidences, dtype=np.float32)
    hit = np.asarray(hits, dtype=np.float32)
    lab = np.asarray(labels)
    num = 0.0
    den = 0.0
    for c in range(num_class):
        idx = lab == c
        cc = conf[idx]
        ch = hit[idx]
        mass = len(cc) // n_bins
        ece = 0.0
        for j in range(n_bins):
            ps = cc[j * mass:(j + 1) * mass].mean()
            acc = ch[j * mass:(j + 1) * mass].mean()
            ece += np.abs(ps - acc) / n_bins
        num += ece ** 2
        den += ece
    return num / den


if __name__ == "__main__":
    key = jax.random.PRNGKey(0)
    k1, k2, k3 = jax.random.split(key, 3)

    N = 480  # 120 samples per class -> mass_in_bin = 8
    confidences = jax.random.uniform(k1, (N,), dtype=jnp.float32)
    hits = (jax.random.uniform(k2, (N,)) < confidences).astype(jnp.float32)
    labels = jax.random.permutation(k3, jnp.arange(N, dtype=jnp.int32) % NUM_CLASS)

    result = jax.block_until_ready(cece_pallas(confidences, hits, labels))

    ref = cece_reference(np.asarray(confidences), np.asarray(hits), np.asarray(labels))
    np.testing.assert_allclose(np.asarray(result), ref, rtol=2e-5, atol=2e-6)
    print("KERNEL_OK")
</pallas_src>

<mosaic_0001>
module attributes {stable_mosaic.version = 11 : i64} {
  func.func @_cece_kernel(%arg0: i32, %arg1: memref<64x1xi32, #tpu.memory_space<vmem>>, %arg2: memref<64x1xi32, #tpu.memory_space<vmem>>, %arg3: memref<64x4xf32, #tpu.memory_space<vmem>>, %arg4: memref<1x256xf32, #tpu.memory_space<vmem>>, %arg5: memref<1x1xf32, #tpu.memory_space<smem>>, %arg6: memref<64x1xf32, #tpu.memory_space<vmem>>) attributes {dimension_semantics = [#tpu.dimension_semantics<arbitrary>], iteration_bounds = array<i64: 2>, scalar_prefetch = 0 : i64, scratch_operands = 1 : i64, tpu.core_type = #tpu.core_type<tc>, window_params = [{pipeline_mode = #tpu.pipeline_mode<synchronous>, transform_indices = @transform_0, window_bounds = array<i64: 64, 1>}, {pipeline_mode = #tpu.pipeline_mode<synchronous>, transform_indices = @transform_1, window_bounds = array<i64: 64, 1>}, {pipeline_mode = #tpu.pipeline_mode<synchronous>, transform_indices = @transform_2, window_bounds = array<i64: 64, 4>}, {transform_indices = @transform_3, window_bounds = array<i64: 1, 256>}, {transform_indices = @transform_4, window_bounds = array<i64: 1, 1>}]} {
    %c0_i32 = arith.constant 0 : i32
    %0 = arith.cmpi eq, %arg0, %c0_i32 : i32
    %1 = arith.extui %0 : i1 to i32
    %c0_i32_0 = arith.constant 0 : i32
    %2 = arith.cmpi ne, %1, %c0_i32_0 : i32
    scf.if %2 {
      %cst_12 = arith.constant 0.000000e+00 : f32
      %26 = vector.broadcast %cst_12 : f32 to vector<64x1xf32>
      %c0_13 = arith.constant 0 : index
      %c0_14 = arith.constant 0 : index
      %27 = vector.load %arg6[%c0_13, %c0_14] : memref<64x1xf32, #tpu.memory_space<vmem>>, vector<64x1xf32>
      tpu.vector_store %arg6[%c0_13, %c0_14], %26 {strides = array<i32>} : memref<64x1xf32, #tpu.memory_space<vmem>>, vector<64x1xf32>,
    } else {
    }
    %c256_i32 = arith.constant 256 : i32
    %3 = arith.muli %arg0, %c256_i32 : i32
    %4 = tpu.iota {dimensions = array<i32: 1>} : vector<64x256xi32>
    %5 = vector.broadcast %3 : i32 to vector<64x256xi32>
    %6 = arith.addi %5, %4 : vector<64x256xi32>
    %c0 = arith.constant 0 : index
    %c0_1 = arith.constant 0 : index
    %7 = vector.load %arg1[%c0, %c0_1] : memref<64x1xi32, #tpu.memory_space<vmem>>, vector<64x1xi32>
    %8 = vector.broadcast %7 : vector<64x1xi32> to vector<64x256xi32>
    %9 = arith.subi %6, %8 : vector<64x256xi32>
    %c0_2 = arith.constant 0 : index
    %c0_3 = arith.constant 0 : index
    %10 = vector.load %arg2[%c0_2, %c0_3] : memref<64x1xi32, #tpu.memory_space<vmem>>, vector<64x1xi32>
    %11 = vector.broadcast %10 : vector<64x1xi32> to vector<64x256xi32>
    %12 = arith.cmpi ult, %9, %11 : vector<64x256xi32>
    %c0_4 = arith.constant 0 : index
    %c0_5 = arith.constant 0 : index
    %13 = vector.load %arg4[%c0_4, %c0_5] : memref<1x256xf32, #tpu.memory_space<vmem>>, vector<1x256xf32>
    %cst = arith.constant 0.000000e+00 : f32
    %14 = vector.shape_cast %13 : vector<1x256xf32> to vector<1x256xf32>
    %15 = vector.broadcast %14 : vector<1x256xf32> to vector<64x256xf32>
    %16 = vector.broadcast %cst : f32 to vector<64x256xf32>
    %17 = arith.select %12, %15, %16 : vector<64x256xi1>, vector<64x256xf32>
    %c0_6 = arith.constant 0 : index
    %c0_7 = arith.constant 0 : index
    %18 = vector.load %arg6[%c0_6, %c0_7] : memref<64x1xf32, #tpu.memory_space<vmem>>, vector<64x1xf32>
    %cst_8 = arith.constant dense<0.000000e+00> : vector<64xf32>
    %19 = vector.multi_reduction <add>, %17, %cst_8 [1] : vector<64x256xf32> to vector<64xf32>
    %20 = vector.shape_cast %19 : vector<64xf32> to vector<64x1xf32>
    %21 = arith.addf %18, %20 : vector<64x1xf32>
    %c0_9 = arith.constant 0 : index
    %c0_10 = arith.constant 0 : index
    %22 = vector.load %arg6[%c0_9, %c0_10] : memref<64x1xf32, #tpu.memory_space<vmem>>, vector<64x1xf32>
    tpu.vector_store %arg6[%c0_9, %c0_10], %21 {strides = array<i32>} : memref<64x1xf32, #tpu.memory_space<vmem>>, vector<64x1xf32>,
    %c1_i32 = arith.constant 1 : i32
    %23 = arith.cmpi eq, %arg0, %c1_i32 : i32
    %24 = arith.extui %23 : i1 to i32
    %c0_i32_11 = arith.constant 0 : i32
    %25 = arith.cmpi ne, %24, %c0_i32_11 : i32
    scf.if %25 {
      %c0_12 = arith.constant 0 : index
      %c0_13 = arith.constant 0 : index
      %26 = vector.load %arg6[%c0_12, %c0_13] : memref<64x1xf32, #tpu.memory_space<vmem>>, vector<64x1xf32>
      %27 = math.absf %26 : vector<64x1xf32>
      %c0_14 = arith.constant 0 : index
      %c0_15 = arith.constant 0 : index
      %28 = vector.load %arg3[%c0_14, %c0_15] : memref<64x4xf32, #tpu.memory_space<vmem>>, vector<64x4xf32>
      %29 = vector.broadcast %27 : vector<64x1xf32> to vector<64x4xf32>
      %30 = arith.mulf %29, %28 : vector<64x4xf32>
      %cst_16 = arith.constant dense<0.000000e+00> : vector<4xf32>
      %31 = vector.multi_reduction <add>, %30, %cst_16 [0] : vector<64x4xf32> to vector<4xf32>
      %32 = vector.shape_cast %31 : vector<4xf32> to vector<1x4xf32>
      %33 = arith.mulf %32, %32 : vector<1x4xf32>
      %34 = vector.shape_cast %33 : vector<1x4xf32> to vector<1x1x4xf32>
      %cst_17 = arith.constant dense<0.000000e+00> : vector<1xf32>
      %35 = vector.multi_reduction <add>, %34, %cst_17 [1, 2] : vector<1x1x4xf32> to vector<1xf32>
      %36 = vector.shape_cast %35 : vector<1xf32> to vector<1x1x1xf32>
      %37 = vector.extract %36[0, 0, 0] : f32 from vector<1x1x1xf32>
      %38 = vector.shape_cast %32 : vector<1x4xf32> to vector<1x1x4xf32>
      %cst_18 = arith.constant dense<0.000000e+00> : vector<1xf32>
      %39 = vector.multi_reduction <add>, %38, %cst_18 [1, 2] : vector<1x1x4xf32> to vector<1xf32>
      %40 = vector.shape_cast %39 : vector<1xf32> to vector<1x1x1xf32>
      %41 = vector.extract %40[0, 0, 0] : f32 from vector<1x1x1xf32>
      %42 = arith.divf %37, %41 : f32
      %c0_19 = arith.constant 0 : index
      %c0_20 = arith.constant 0 : index
      %43 = memref.load %arg5[%c0_19, %c0_20] : memref<1x1xf32, #tpu.memory_space<smem>>
      memref.store %42, %arg5[%c0_19, %c0_20] : memref<1x1xf32, #tpu.memory_space<smem>>
    } else {
    }
    return
  }
  func.func @transform_0(%arg0: i32) -> (i32, i32) {
    %c0_i32 = arith.constant 0 : i32
    %c0_i32_0 = arith.constant 0 : i32
    %c0_i32_1 = arith.constant 0 : i32
    return %c0_i32, %c0_i32_0 : i32, i32
  }
  func.func @transform_1(%arg0: i32) -> (i32, i32) {
    %c0_i32 = arith.constant 0 : i32
    %c0_i32_0 = arith.constant 0 : i32
    %c0_i32_1 = arith.constant 0 : i32
    return %c0_i32, %c0_i32_0 : i32, i32
  }
  func.func @transform_2(%arg0: i32) -> (i32, i32) {
    %c0_i32 = arith.constant 0 : i32
    %c0_i32_0 = arith.constant 0 : i32
    %c0_i32_1 = arith.constant 0 : i32
    return %c0_i32, %c0_i32_0 : i32, i32
  }
  func.func @transform_3(%arg0: i32) -> (i32, i32) {
    %c0_i32 = arith.constant 0 : i32
    %c0_i32_0 = arith.constant 0 : i32
    return %c0_i32, %arg0 : i32, i32
  }
  func.func @transform_4(%arg0: i32) -> (i32, i32) {
    %c0_i32 = arith.constant 0 : i32
    %c0_i32_0 = arith.constant 0 : i32
    %c0_i32_1 = arith.constant 0 : i32
    return %c0_i32, %c0_i32_0 : i32, i32
  }
}

</mosaic_0001>

<bundles_post_ra>
// kernel: sub.8
= control target key start
LH: loop header
LB: loop body
LE: loop exit
PB: predicated region body
PF: predicated region fallthrough
CT: control target
= control target key end

     0   :  { %3 = vsyncpa [#allocation1], 0  ;;  %s116_s0 = inlined_call_operand.hbm [shape: f32[480], index: 0, kind: input, shape index: {}]   ;;  %s117_s1 = inlined_call_operand.hbm [shape: f32[480], index: 1, kind: input, shape index: {}]   ;;  %s118_s2 = inlined_call_operand.vmem [shape: f32[480], index: 2, kind: output, shape index: {}]  }
   0x1   :  { %s8_s0 = sshll.u32 %s116_s0, 4  ;;  %s9_s0 = int_to_ptr.hbm [resolvable:$true] %s8_s0 }
   0x2   :  { %4 = vsyncpa [#allocation3], 0  ;;  %s90_s11 = smov [#allocation0]   ;;  %s17_s1 = sshll.u32 %s117_s1, 4  ;;  %s18_s1 = int_to_ptr.hbm [resolvable:$true] %s17_s1 }
   0x3   :  { %s10_s12 = sshll.u32 %s90_s11, 4  ;;  %s91_s15 = smov [#allocation2]   ;;  %s11_s12 = int_to_ptr.vmem [resolvable:$true] %s10_s12 }
   0x4   :  { %13 = dma.hbm_to_vmem [thread:$0]  %s9_s0, 64, %s11_s12, [#allocation1]  }
   0x5   :  { %s19_s16 = sshll.u32 %s91_s15, 4  ;;  %s20_s16 = int_to_ptr.vmem [resolvable:$true] %s19_s16 }
   0x6   :  { %22 = dma.hbm_to_vmem [thread:$0]  %s18_s1, 64, %s20_s16, [#allocation3]  }
   0x7   :  { %86 = dma.done.wait [#allocation1], 64  }
   0x8   :  { %87 = vsyncadd [#allocation1], 4294967232 }
   0x9   :  { %88 = dma.done.wait [#allocation3], 64  }
   0xa   :  { %89 = vsyncadd [#allocation3], 4294967232  ;;  %v27_v0 = vld [vmem:[#allocation0] sm:$0xf]  ;;  %v28_v1 = vld [vmem:[#allocation2] sm:$0xf] }
   0xb   :  { %v31_v2 = vsub.f32 %v27_v0, %v28_v1 }
   0xd   :  { %33 = vst [vmem:[%s118_s2] sm:$0xf] %v31_v2 }
   0xe   :  { %34 = vsyncpa [#allocation1], 1 }
   0xf   :  { %35 = vsyncpa [#allocation3], 1 }

// kernel: cece_pallas.1
= control target key start
LH: loop header
LB: loop body
LE: loop exit
PB: predicated region body
PF: predicated region fallthrough
CT: control target
= control target key end

     0   :  { %9 = vsyncpa [#allocation4], 0  ;;  %s716_s15 = smov 0   ;;  %s912_s0 = inlined_call_operand.vmem [shape: s32[64,1], index: 0, kind: input, shape index: {}]   ;;  %s913_s1 = inlined_call_operand.vmem [shape: u32[64,1], index: 1, kind: input, shape index: {}]   ;;  %s914_s2 = inlined_call_operand.vmem [shape: f32[64,4], index: 2, kind: input, shape index: {}]   ;;  %s915_s3 = inlined_call_operand.vmem [shape: f32[1,512], index: 3, kind: input, shape index: {}]   ;;  %s916_s4 = inlined_call_operand.hbm [shape: f32[1,1], index: 4, kind: output, shape index: {}]  }
   0x1 LB: > { %s722_s16 = sadd.s32 4294967295, %s685_s15   ;;  %p588_p0 = scmp.ge.s32.totalorder %s685_s15, 1  ;;  %s685_s15 = sphi %s716_s15, %s15_s15  }
   0x2   : > { %p158_p1 = scmp.lt.s32.totalorder %s685_s15, 3 }
   0x4   : > { %p159_p2 = pnand %p588_p0, %p158_p1 }
   0x5   : > { %s589_s17 = sshll.u32 (!%p159_p2), %s722_s16, 1  ;;  %p590_p4 = scmp.ne.s32.totalorder (!%p159_p2), %s722_s16, 0 }
   0x6   : > { %162 = sbr.rel (%p159_p2) target bundleno = 723 (0x2d3), region = 36  ;;  %p179_p3 = scmp.lt.s32.totalorder (!%p159_p2), %s589_s17, 3 }
   0xb   : > { %s926_s17 = smov (!%p179_p3, %s589_s17), 3  ;;  %186 = sbr.rel (%p590_p4) target bundleno = 25 (0x19), region = 40 }
   0xc   : > { %s181_s20 = scalar_lea.vmem %s915_s3, %s926_s17 }
  0x10   : > { %vm187_vm0 = vcmask 7168   ;;  %v687_v0 = vmov 0.0  }
  0x11   : > { %188 = vst.msk [vmem:[#allocation2] sm:$0xff] %vm187_vm0, %v687_v0 }
  0x12   : > { %189 = vst.msk [vmem:[#allocation2 + $0x8] sm:$0xff] %vm187_vm0, %v687_v0 }
  0x13   : > { %190 = vst.msk [vmem:[#allocation2 + $0x10] sm:$0xff] %vm187_vm0, %v687_v0 }
  0x14   : > { %191 = vst.msk [vmem:[#allocation2 + $0x18] sm:$0xff] %vm187_vm0, %v687_v0 }
  0x15   : > { %192 = vst.msk [vmem:[#allocation2 + $0x20] sm:$0xff] %vm187_vm0, %v687_v0 }
  0x16   : > { %193 = vst.msk [vmem:[#allocation2 + $0x28] sm:$0xff] %vm187_vm0, %v687_v0 }
  0x17   : > { %194 = vst.msk [vmem:[#allocation2 + $0x30] sm:$0xff] %vm187_vm0, %v687_v0 }
  0x18   : > { %195 = vst.msk [vmem:[#allocation2 + $0x38] sm:$0xff] %vm187_vm0, %v687_v0 }
  0x19 PF: > { %v207_v1 = vld [vmem:[%s912_s0 + $0x20] sm:$0xff]  ;;  %v205_v2 = vld [vmem:[%s912_s0 + $0x10] sm:$0xff]  ;;  %v688_v4 = vmov 0   ;;  %v208_v5 = vld [vmem:[%s912_s0 + $0x28] sm:$0xff]  ;;  %v197_v19 = vlaneseq  ;;  %s591_s5 = sshll.u32 %s722_s16, 8  ;;  %p624_p5 = scmp.ne.s32.totalorder %s722_s16, 1 }
  0x1a   : > { %v203_v3 = vld [vmem:[%s912_s0] sm:$0xff]  ;;  %655 = vset.pattern.permute.xlu2 %v688_v4  ;;  %654 = vset.pattern.permute.xlu1 %v688_v4  ;;  %v206_v6 = vld [vmem:[%s912_s0 + $0x18] sm:$0xff]  ;;  %v204_v7 = vld [vmem:[%s912_s0 + $0x8] sm:$0xff]  ;;  %v200_v23 = vstv %s591_s5 }
  0x1b   : > { %653 = vset.pattern.permute.xlu0 %v688_v4  ;;  %224 = vperm.xlu2 %655, %v207_v1   ;;  %v251_v8 = vld [vmem:[%s913_s1] sm:$0xff]  ;;  %v210_v9 = vld [vmem:[%s912_s0 + $0x38] sm:$0xff]  ;;  %v209_v10 = vld [vmem:[%s912_s0 + $0x30] sm:$0xff]  ;;  %v198_v20 = vand.u32 127, %v197_v19 }
  0x1c   : > { %218 = vperm.xlu1 %654, %v205_v2   ;;  %212 = vperm.xlu0 %653, %v203_v3   ;;  %v254_v11 = vld [vmem:[%s913_s1 + $0x18] sm:$0xff]  ;;  %v253_v12 = vld [vmem:[%s913_s1 + $0x10] sm:$0xff]  ;;  %v252_v13 = vld [vmem:[%s913_s1 + $0x8] sm:$0xff] }
  0x1d   : > { %v257_v14 = vld [vmem:[%s913_s1 + $0x30] sm:$0xff]  ;;  %v256_v15 = vld [vmem:[%s913_s1 + $0x28] sm:$0xff]  ;;  %v255_v16 = vld [vmem:[%s913_s1 + $0x20] sm:$0xff]  ;;  %v199_v22 = vadd.s32 128, %v198_v20  ;;  %v787_v24 = vadd.s32 %v200_v23, %v198_v20 }
  0x1e   : > { %v258_v17 = vld [vmem:[%s913_s1 + $0x38] sm:$0xff]  ;;  %v331_v27 = vld [vmem:[%s181_s20] sm:$0x3] }
  0x1f   : > { %v789_v25 = vadd.s32 %v200_v23, %v199_v22  ;;  %v798_v33 = vperm.slane %v331_v27, 0  ;;  %v800_v34 = vperm.slane %v331_v27, 1 }
  0x23   : > { %227 = vperm.xlu2 %655, %v208_v5  }
  0x24   : > { %221 = vperm.xlu1 %654, %v206_v6   ;;  %215 = vperm.xlu0 %653, %v204_v7  }
  0x2b   : > { %260 = vperm.xlu2 %655, %v251_v8  }
  0x2c   : > { %233 = vperm.xlu1 %654, %v210_v9   ;;  %230 = vperm.xlu0 %653, %v209_v10  }
  0x33   : > { %269 = vperm.xlu2 %655, %v254_v11  }
  0x34   : > { %266 = vperm.xlu1 %654, %v253_v12   ;;  %263 = vperm.xlu0 %653, %v252_v13  }
  0x3b   : > { %278 = vperm.xlu2 %655, %v257_v14  }
  0x3c   : > { %275 = vperm.xlu1 %654, %v256_v15   ;;  %272 = vperm.xlu0 %653, %v255_v16  }
  0x44   : > { %281 = vperm.xlu0 %653, %v258_v17  }
  0x75   : > { %v782_v18 = vpop.permute.xlu2 %224 }
  0x76   : > { %v243_v53 = vsub.s32 %v787_v24, %v782_v18  ;;  %v244_v8 = vsub.s32 %v789_v25, %v782_v18 }
  0x78   : > { %v608_v17 = vxor.u32 2147483648, %v243_v53  ;;  %v610_v22 = vxor.u32 2147483648, %v244_v8  ;;  %v354_v53 = vld [vmem:[#allocation2 + $0x8] sm:$0xff] }
  0x7d   : > { %v784_v21 = vpop.permute.xlu2 %227 }
  0x7e   : > { %v245_v14 = vsub.s32 %v787_v24, %v784_v21  ;;  %v246_v18 = vsub.s32 %v789_v25, %v784_v21 }
  0x85   : > { %v261_v26 = vpop.permute.xlu2 %260 }
  0x86   : > { %v593_v30 = vxor.u32 2147483648, %v261_v26 }
  0x8d   : > { %v270_v42 = vpop.permute.xlu2 %269 }
  0x8e   : > { %v219_v28 = vpop.permute.xlu1 %218  ;;  %v213_v29 = vpop.permute.xlu0 %212  ;;  %v605_v54 = vxor.u32 2147483648, %v270_v42 }
  0x8f   : > { %v235_v31 = vsub.s32 %v787_v24, %v213_v29  ;;  %v236_v32 = vsub.s32 %v789_v25, %v213_v29  ;;  %v239_v45 = vsub.s32 %v787_v24, %v219_v28  ;;  %v240_v46 = vsub.s32 %v789_v25, %v219_v28 }
  0x90   : > { %v612_v29 = vxor.u32 2147483648, %v245_v14 }
  0x91   : > { %v592_v35 = vxor.u32 2147483648, %v235_v31  ;;  %v594_v36 = vxor.u32 2147483648, %v236_v32  ;;  %v600_v55 = vxor.u32 2147483648, %v239_v45  ;;  %v602_v56 = vxor.u32 2147483648, %v240_v46 }
  0x92   : > { %v614_v31 = vxor.u32 2147483648, %v246_v18 }
  0x93   : > { %vm285_vm1 = vcmp.lt.s32.totalorder %v592_v35, %v593_v30  ;;  %vm288_vm2 = vcmp.lt.s32.totalorder %v594_v36, %v593_v30 }
  0x94   : > { %v337_v37 = vsel %vm285_vm1, %v798_v33, 0.0  ;;  %v338_v38 = vsel %vm288_vm2, %v800_v34, 0.0  ;;  %vm393_vm1 = vcmask 7168  }
  0x95   : > { %v361_v39 = vadd.f32 %v338_v38, %v337_v37  ;;  %v279_v63 = vpop.permute.xlu2 %278 }
  0x96   : > { %v222_v40 = vpop.permute.xlu1 %221  ;;  %v216_v41 = vpop.permute.xlu0 %215  ;;  %v617_v9 = vxor.u32 2147483648, %v279_v63 }
  0x97   : > { %362 = vadd.xlane.f32.xlu1 %v361_v39  ;;  %v237_v47 = vsub.s32 %v787_v24, %v216_v41  ;;  %v238_v48 = vsub.s32 %v789_v25, %v216_v41  ;;  %v241_v49 = vsub.s32 %v787_v24, %v222_v40  ;;  %v242_v50 = vsub.s32 %v789_v25, %v222_v40 }
  0x99   : > { %v596_v59 = vxor.u32 2147483648, %v237_v47  ;;  %v598_v60 = vxor.u32 2147483648, %v238_v48  ;;  %v604_v0 = vxor.u32 2147483648, %v241_v49  ;;  %v606_v1 = vxor.u32 2147483648, %v242_v50  ;;  %v353_v49 = vld [vmem:[#allocation2] sm:$0xff] }
  0x9b   : > { %vm822_vm7 = vcmp.lt.s32.totalorder %v604_v0, %v605_v54  ;;  %vm826_vm8 = vcmp.lt.s32.totalorder %v606_v1, %v605_v54  ;;  %v358_v1 = vld [vmem:[#allocation2 + $0x28] sm:$0xff] }
  0x9c   : > { %v343_v26 = vsel %vm822_vm7, %v798_v33, 0.0  ;;  %v344_v27 = vsel %vm826_vm8, %v800_v34, 0.0 }
  0x9d   : > { %v370_v32 = vadd.f32 %v344_v27, %v343_v26 }
  0x9e   : > { %v804_v43 = vpop.permute.xlu1 %233  ;;  %v231_v44 = vpop.permute.xlu0 %230 }
  0x9f   : > { %v247_v51 = vsub.s32 %v787_v24, %v231_v44  ;;  %v248_v52 = vsub.s32 %v789_v25, %v231_v44  ;;  %v249_v37 = vsub.s32 %v787_v24, %v804_v43  ;;  %v250_v38 = vsub.s32 %v789_v25, %v804_v43 }
  0xa1   : > { %v616_v2 = vxor.u32 2147483648, %v247_v51  ;;  %v618_v3 = vxor.u32 2147483648, %v248_v52  ;;  %v620_v42 = vxor.u32 2147483648, %v249_v37  ;;  %v622_v44 = vxor.u32 2147483648, %v250_v38  ;;  %v355_v52 = vld [vmem:[#allocation2 + $0x10] sm:$0xff] }
  0xa3   : > { %vm832_vm9 = vcmp.lt.s32.totalorder %v616_v2, %v617_v9  ;;  %vm836_vm10 = vcmp.lt.s32.totalorder %v618_v3, %v617_v9  ;;  %v360_v2 = vld [vmem:[#allocation2 + $0x38] sm:$0xff] }
  0xa4   : > { %v349_v28 = vsel %vm832_vm9, %v798_v33, 0.0  ;;  %v350_v21 = vsel %vm836_vm10, %v800_v34, 0.0 }
  0xa5   : > { %v379_v39 = vadd.f32 %v350_v21, %v349_v28 }
  0xa6   : > { %v267_v57 = vpop.permute.xlu1 %266  ;;  %v264_v58 = vpop.permute.xlu0 %263 }
  0xa7   : > { %v601_v61 = vxor.u32 2147483648, %v267_v57  ;;  %v597_v62 = vxor.u32 2147483648, %v264_v58  ;;  %v357_v58 = vld [vmem:[#allocation2 + $0x20] sm:$0xff] }
  0xa9   : > { %vm297_vm3 = vcmp.lt.s32.totalorder %v600_v55, %v601_v61  ;;  %vm300_vm4 = vcmp.lt.s32.totalorder %v602_v56, %v601_v61  ;;  %vm291_vm5 = vcmp.lt.s32.totalorder %v596_v59, %v597_v62  ;;  %vm294_vm6 = vcmp.lt.s32.totalorder %v598_v60, %v597_v62 }
  0xaa   : > { %v341_v4 = vsel %vm297_vm3, %v798_v33, 0.0  ;;  %v342_v5 = vsel %vm300_vm4, %v800_v34, 0.0  ;;  %v339_v6 = vsel %vm291_vm5, %v798_v33, 0.0  ;;  %v340_v7 = vsel %vm294_vm6, %v800_v34, 0.0 }
  0xab   : > { %v367_v10 = vadd.f32 %v342_v5, %v341_v4  ;;  %v364_v11 = vadd.f32 %v340_v7, %v339_v6 }
  0xad   : > { %368 = vadd.xlane.f32.xlu0 %v367_v10  ;;  %365 = vadd.xlane.f32.xlu2 %v364_v11 }
  0xae   : > { %v276_v19 = vpop.permute.xlu1 %275  ;;  %v273_v20 = vpop.permute.xlu0 %272 }
  0xaf   : > { %v609_v23 = vxor.u32 2147483648, %v273_v20  ;;  %v613_v30 = vxor.u32 2147483648, %v276_v19 }
  0xb1   : > { %vm309_vm11 = vcmp.lt.s32.totalorder %v608_v17, %v609_v23  ;;  %vm312_vm12 = vcmp.lt.s32.totalorder %v610_v22, %v609_v23  ;;  %vm315_vm13 = vcmp.lt.s32.totalorder %v612_v29, %v613_v30  ;;  %vm318_vm14 = vcmp.lt.s32.totalorder %v614_v31, %v613_v30 }
  0xb2   : > { %v345_v35 = vsel %vm309_vm11, %v798_v33, 0.0  ;;  %v346_v36 = vsel %vm312_vm12, %v800_v34, 0.0  ;;  %v347_v46 = vsel %vm315_vm13, %v798_v33, 0.0  ;;  %v348_v47 = vsel %vm318_vm14, %v800_v34, 0.0 }
  0xb3   : > { %v373_v40 = vadd.f32 %v346_v36, %v345_v35  ;;  %v376_v43 = vadd.f32 %v348_v47, %v347_v46 }
  0xb5   : > { %380 = vadd.xlane.f32.xlu0 %v379_v39  ;;  %371 = vadd.xlane.f32.xlu2 %v370_v32 }
  0xb6   : > { %374 = vadd.xlane.f32.xlu1 %v373_v40  ;;  %v282_v41 = vpop.permute.xlu0 %281 }
  0xb7   : > { %v621_v45 = vxor.u32 2147483648, %v282_v41 }
  0xb9   : > { %vm327_vm15 = vcmp.lt.s32.totalorder %v620_v42, %v621_v45  ;;  %vm330_vm0 = vcmp.lt.s32.totalorder %v622_v44, %v621_v45 }
  0xba   : > { %v351_v24 = vsel %vm327_vm15, %v798_v33, 0.0  ;;  %v352_v25 = vsel %vm330_vm0, %v800_v34, 0.0  ;;  %v359_v33 = vld [vmem:[#allocation2 + $0x30] sm:$0xff]  ;;  %v356_v34 = vld [vmem:[#allocation2 + $0x18] sm:$0xff] }
  0xbb   : > { %v382_v48 = vadd.f32 %v352_v25, %v351_v24 }
  0xbd   : > { %377 = vadd.xlane.f32.xlu2 %v376_v43 }
  0xbe   : > { %383 = vadd.xlane.f32.xlu1 %v382_v48 }
 0x10a   : > { %v363_v50 = vpop.xlane.xlu1 %362 }
 0x10b   : > { %v385_v51 = vadd.f32 %v363_v50, %v353_v49 }
 0x10d   : > { %394 = vst.msk [vmem:[#allocation2] sm:$0xff] %vm393_vm1, %v385_v51 }
 0x120   : > { %v369_v54 = vpop.xlane.xlu0 %368  ;;  %v366_v55 = vpop.xlane.xlu2 %365 }
 0x121   : > { %v387_v56 = vadd.f32 %v369_v54, %v355_v52  ;;  %v386_v57 = vadd.f32 %v366_v55, %v354_v53 }
 0x123   : > { %396 = vst.msk [vmem:[#allocation2 + $0x10] sm:$0xff] %vm393_vm1, %v387_v56 }
 0x124   : > { %395 = vst.msk [vmem:[#allocation2 + $0x8] sm:$0xff] %vm393_vm1, %v386_v57 }
 0x128   : > { %v381_v59 = vpop.xlane.xlu0 %380  ;;  %v372_v60 = vpop.xlane.xlu2 %371 }
 0x129   : > { %v391_v61 = vadd.f32 %v381_v59, %v359_v33  ;;  %v388_v62 = vadd.f32 %v372_v60, %v356_v34  ;;  %v375_v63 = vpop.xlane.xlu1 %374 }
 0x12a   : > { %v389_v0 = vadd.f32 %v375_v63, %v357_v58 }
 0x12b   : > { %400 = vst.msk [vmem:[#allocation2 + $0x30] sm:$0xff] %vm393_vm1, %v391_v61 }
 0x12c   : > { %397 = vst.msk [vmem:[#allocation2 + $0x18] sm:$0xff] %vm393_vm1, %v388_v62 }
 0x12d   : > { %398 = vst.msk [vmem:[#allocation2 + $0x20] sm:$0xff] %vm393_vm1, %v389_v0 }
 0x130   : > { %v378_v3 = vpop.xlane.xlu2 %377  ;;  %405 = sbr.rel (%p624_p5) target bundleno = 717 (0x2cd), region = 44 }
 0x131   : > { %v390_v4 = vadd.f32 %v378_v3, %v358_v1  ;;  %v384_v5 = vpop.xlane.xlu1 %383 }
 0x132   : > { %v392_v6 = vadd.f32 %v384_v5, %v360_v2 }
 0x133   : > { %399 = vst.msk [vmem:[#allocation2 + $0x28] sm:$0xff] %vm393_vm1, %v390_v4 }
 0x134   : > { %401 = vst.msk [vmem:[#allocation2 + $0x38] sm:$0xff] %vm393_vm1, %v392_v6 }
 0x135   : > { %v408_v7 = vld [vmem:[#allocation2 + $0x10] sm:$0xff]  ;;  %v406_v8 = vld [vmem:[#allocation2] sm:$0xff]  ;;  %v689_v9 = vmov 0   ;;  %v409_v12 = vld [vmem:[#allocation2 + $0x18] sm:$0xff]  ;;  %vm478_vm2 = vcmask 31744   ;;  %vm501_vm3 = vcmask 24576  }
 0x136   : > { %657 = vset.pattern.permute.xlu1 %v689_v9  ;;  %656 = vset.pattern.permute.xlu0 %v689_v9  ;;  %v416_v10 = vand.u32 2147483647, %v408_v7  ;;  %v414_v11 = vand.u32 2147483647, %v406_v8  ;;  %v407_v13 = vld [vmem:[#allocation2 + $0x8] sm:$0xff]  ;;  %v410_v14 = vld [vmem:[#allocation2 + $0x20] sm:$0xff] }
 0x137   : > { %658 = vset.pattern.permute.xlu2 %v689_v9  ;;  %v418_v15 = vand.u32 2147483647, %v410_v14  ;;  %v417_v16 = vand.u32 2147483647, %v409_v12  ;;  %v415_v17 = vand.u32 2147483647, %v407_v13 }
 0x138   : > { %442 = vperm.xlu1 %657, %v416_v10   ;;  %432 = vperm.xlu0 %656, %v414_v11   ;;  %v412_v22 = vld [vmem:[#allocation2 + $0x30] sm:$0xff]  ;;  %v422_v29 = vld [vmem:[%s914_s2] sm:$0xff]  ;;  %v423_v31 = vld [vmem:[%s914_s2 + $0x8] sm:$0xff] }
 0x139   : > { %452 = vperm.xlu2 %658, %v418_v15   ;;  %v420_v26 = vand.u32 2147483647, %v412_v22  ;;  %v424_v30 = vld [vmem:[%s914_s2 + $0x10] sm:$0xff]  ;;  %v425_v35 = vld [vmem:[%s914_s2 + $0x18] sm:$0xff]  ;;  %v426_v40 = vld [vmem:[%s914_s2 + $0x20] sm:$0xff] }
 0x13a   : > { %v411_v18 = vld [vmem:[#allocation2 + $0x28] sm:$0xff]  ;;  %v428_v48 = vld [vmem:[%s914_s2 + $0x30] sm:$0xff]  ;;  %v429_v52 = vld [vmem:[%s914_s2 + $0x38] sm:$0xff] }
 0x13b   : > { %v419_v19 = vand.u32 2147483647, %v411_v18  ;;  %v413_v20 = vld [vmem:[#allocation2 + $0x38] sm:$0xff]  ;;  %v427_v45 = vld [vmem:[%s914_s2 + $0x28] sm:$0xff] }
 0x13c   : > { %v421_v23 = vand.u32 2147483647, %v413_v20 }
 0x140   : > { %447 = vperm.xlu1 %657, %v417_v16   ;;  %437 = vperm.xlu0 %656, %v415_v17  }
 0x141   : > { %457 = vperm.xlu2 %658, %v419_v19  }
 0x148   : > { %467 = vperm.xlu1 %657, %v421_v23   ;;  %462 = vperm.xlu0 %656, %v420_v26  }
 0x193   : > { %v453_v21 = vpop.permute.xlu2 %452 }
 0x194   : > { %v474_v24 = vmul.f32 %v453_v21, %v426_v40 }
 0x196   : > { %v486_v55 = vsel %vm478_vm2, %v474_v24, 0.0 }
 0x19b   : > { %v458_v46 = vpop.permute.xlu2 %457 }
 0x19c   : > { %v475_v49 = vmul.f32 %v458_v46, %v427_v45 }
 0x19e   : > { %v488_v33 = vsel %vm478_vm2, %v475_v49, 0.0 }
 0x1aa   : > { %v443_v27 = vpop.permute.xlu1 %442  ;;  %v433_v28 = vpop.permute.xlu0 %432 }
 0x1ab   : > { %v470_v32 = vmul.f32 %v433_v28, %v422_v29  ;;  %v472_v38 = vmul.f32 %v443_v27, %v424_v30 }
 0x1ad   : > { %v479_v41 = vsel %vm478_vm2, %v470_v32, 0.0  ;;  %v482_v25 = vsel %vm478_vm2, %v472_v38, 0.0 }
 0x1b2   : > { %v448_v36 = vpop.permute.xlu1 %447  ;;  %v438_v37 = vpop.permute.xlu0 %437 }
 0x1b3   : > { %v471_v39 = vmul.f32 %v438_v37, %v423_v31  ;;  %v473_v42 = vmul.f32 %v448_v36, %v425_v35 }
 0x1b5   : > { %v480_v44 = vsel %vm478_vm2, %v471_v39, 0.0  ;;  %v484_v50 = vsel %vm478_vm2, %v473_v42, 0.0 }
 0x1b6   : > { %v481_v47 = vadd.f32 %v480_v44, %v479_v41 }
 0x1b8   : > { %v483_v43 = vadd.f32 %v482_v25, %v481_v47 }
 0x1ba   : > { %v485_v51 = vadd.f32 %v484_v50, %v483_v43  ;;  %v468_v53 = vpop.permute.xlu1 %467  ;;  %v463_v54 = vpop.permute.xlu0 %462 }
 0x1bb   : > { %v476_v56 = vmul.f32 %v463_v54, %v428_v48  ;;  %v477_v34 = vmul.f32 %v468_v53, %v429_v52 }
 0x1bc   : > { %v487_v57 = vadd.f32 %v486_v55, %v485_v51 }
 0x1bd   : > { %v490_v59 = vsel %vm478_vm2, %v476_v56, 0.0  ;;  %v492_v61 = vsel %vm478_vm2, %v477_v34, 0.0 }
 0x1be   : > { %v489_v58 = vadd.f32 %v488_v33, %v487_v57 }
 0x1c0   : > { %v491_v60 = vadd.f32 %v490_v59, %v489_v58 }
 0x1c2   : > { %v493_v62 = vadd.f32 %v492_v61, %v491_v60 }
 0x1c4   : > { %v494_v63 = vrot.slane %v493_v62, 4 }
 0x1c6   : > { %v495_v0 = vadd.f32 %v494_v63, %v493_v62 }
 0x1c8   : > { %v496_v1 = vrot.slane %v495_v0, 2 }
 0x1ca   : > { %v497_v2 = vadd.f32 %v496_v1, %v495_v0 }
 0x1cc   : > { %v498_v3 = vrot.slane %v497_v2, 1 }
 0x1ce   : > { %v499_v4 = vadd.f32 %v498_v3, %v497_v2 }
 0x1d0   : > { %v512_v5 = vsel %vm501_vm3, %v499_v4, 0.0  ;;  %v500_v6 = vmul.f32 %v499_v4, %v499_v4 }
 0x1d1   : > { %513 = vadd.xlane.f32.xlu0 %v512_v5 }
 0x1d2   : > { %v502_v7 = vsel %vm501_vm3, %v500_v6, 0.0 }
 0x1d3   : > { %503 = vadd.xlane.f32.xlu2 %v502_v7 }
 0x244   : > { %v514_v8 = vpop.xlane.xlu0 %513 }
 0x245   : > { %v515_v9 = vrot.slane %v514_v8, 4 }
 0x246   : > { %v504_v10 = vpop.xlane.xlu2 %503 }
 0x247   : > { %v516_v11 = vadd.f32 %v515_v9, %v514_v8  ;;  %v505_v12 = vrot.slane %v504_v10, 4 }
 0x249   : > { %v517_v13 = vrot.slane %v516_v11, 2  ;;  %v506_v14 = vadd.f32 %v505_v12, %v504_v10 }
 0x24b   : > { %v518_v15 = vadd.f32 %v517_v13, %v516_v11  ;;  %v507_v16 = vrot.slane %v506_v14, 2 }
 0x24d   : > { %v508_v17 = vadd.f32 %v507_v16, %v506_v14  ;;  %v519_v18 = vrot.slane %v518_v15, 1 }
 0x24f   : > { %v509_v19 = vrot.slane %v508_v17, 1  ;;  %v520_v22 = vadd.f32 %v519_v18, %v518_v15 }
 0x251   : > { %v510_v20 = vadd.f32 %v509_v19, %v508_v17 }
 0x253   : > { %629 = vpush %v510_v20 }
 0x254   : > { %631 = vpush %v520_v22 }
 0x284   : > { %s630_s26 = spop %629 }
 0x285   : > { %s632_s27 = spop %631 }
 0x286   : > { %v522_v23 = vstv %s632_s27 }
 0x287   : > { %659 = vrcp.f32 %v522_v23  ;;  %v534_v21 = vand.u32 2147483648, %v522_v23  ;;  %v532_v30 = vand.u32 2147483647, %v522_v23  ;;  %vm528_vm5 = vweird.f32 %v522_v23 }
 0x289   : > { %v535_v32 = vor.u32 1.1754944e-38, %v534_v21  ;;  %vm533_vm7 = vcmp.eq.f32.partialorder %v532_v30, 8.507059e+37 }
 0x28d   : > { %v660_v26 = vpop.eup %659 }
 0x28e   : > { %v524_v27 = vmul.f32 %v660_v26, %v522_v23  ;;  %vm529_vm4 = vweird.f32 %v660_v26 }
 0x28f   : > { %vm530_vm6 = vmor %vm528_vm5, %vm529_vm4 }
 0x290   : > { %v525_v28 = vsub.f32 1.0, %v524_v27 }
 0x292   : > { %v526_v29 = vmul.f32 %v660_v26, %v525_v28 }
 0x294   : > { %v527_v31 = vadd.f32 %v660_v26, %v526_v29 }
 0x296   : > { %v531_v35 = vsel %vm530_vm6, %v660_v26, %v527_v31 }
 0x297   : > { %v536_v36 = vsel %vm533_vm7, %v535_v32, %v531_v35 }
 0x298   : > { %633 = vpush %v536_v36 }
 0x2c9   : > { %s634_s28 = spop %633 }
 0x2ca   : > { %s538_s29 = smul.f32 %s634_s28, %s630_s26 }
 0x2cc   : > { %540 = sst [smem:[#allocation3]] %s538_s29 }
 0x2cd PF: > { %p639_p6 = scmp.eq.s32.totalorder %s722_s16, 1  ;;  %s547_s6 = sshll.u32 %s916_s4, 4  ;;  %s548_s6 = int_to_ptr.hbm [resolvable:$true] %s547_s6 }
 0x2ce   : > { %s690_s7 = smov [#allocation3]  }
 0x2cf   : > { %636 = dma.smem_to_hbm (%p639_p6), %s690_s7, 16, %s548_s6, [#allocation4]  }
 0x2d0   : > { %680 = dma.done.wait (%p639_p6), [#allocation4], 16  }
 0x2d1   : > { %682 = vsyncadd (%p639_p6), [#allocation4], 4294967280 }
 0x2d2   : > { %556 = sfence }
 0x2d3 PF: > { %s15_s15 = sadd.s32 1, %s685_s15  }
 0x2d4   : > { %p12_p7 = scmp.ge.s32.totalorder %s15_s15, 4  }
 0x2d6   :  { %14 = sbr.rel (!%p12_p7) target bundleno = 1 (0x1), region = 72 }
 0x2db   :  { %562 = vsyncpa [#allocation4], 1 }
 0x2dc   :  { %564 = vsyncpa [#allocation4 + $0x1], 1 }

</bundles_post_ra>
